<compile_context>
chip_gen: v7x
topology: tpu7x:2x2x1
jax: 0.10.0
libtpu: 0.0.40
codegen_flags: <defaults>
</compile_context>

<pallas_src>
import jax
import jax.numpy as jnp
from jax.experimental import pallas as pl
from jax.experimental.pallas import tpu as pltpu


def _round_up(x, m):
    return (x + m - 1) // m * m


def _mlp_head(emb_f32, w1_ref, b1_ref, w2_ref, b2_ref, out_ref):
    """Linear(D,256) + ReLU + Linear(256,Cpad); f32 accumulation & epilogue."""
    # Single cast of the (already-f32) embedding to the matmul operand dtype.
    h = jnp.dot(emb_f32.astype(w1_ref.dtype), w1_ref[...],
                preferred_element_type=jnp.float32)
    h = jnp.maximum(h + b1_ref[...], 0.0)                  # f32 bias + ReLU (VPU)
    o = jnp.dot(h.astype(w2_ref.dtype), w2_ref[...],
                preferred_element_type=jnp.float32)
    out_ref[...] = (o + b2_ref[...]).astype(out_ref.dtype)  # lane-dense [TB,128]


def _head_both_kernel(img_ref, txt_ref, w1_ref, b1_ref, w2_ref, b2_ref, out_ref):
    # 'both' mode: average the two CLIP embeddings in f32 (exact PyTorch
    # semantics), then one cast to the matmul dtype inside _mlp_head.
    emb = (img_ref[...].astype(jnp.float32)
           + txt_ref[...].astype(jnp.float32)) * 0.5
    _mlp_head(emb, w1_ref, b1_ref, w2_ref, b2_ref, out_ref)


def _head_single_kernel(feat_ref, w1_ref, b1_ref, w2_ref, b2_ref, out_ref):
    # 'image' / 'text' modes: single feature tensor, no duplicated DMA.
    _mlp_head(feat_ref[...].astype(jnp.float32),
              w1_ref, b1_ref, w2_ref, b2_ref, out_ref)


def _pick_batch_tile(B, sub):
    if B <= sub:
        return sub
    # >=2 grid steps so the "parallel" batch axis shards over v7x's two
    # TensorCores and the pipeline double-buffers; for large batches keep the
    # tile >=256 rows so single-TC chips (v5e/v6e) stay near the HBM roofline.
    target_steps = 8 if B >= 2048 else (4 if B >= 1024 else 2)
    return min(512, max(sub, _round_up(pl.cdiv(B, target_steps), sub)))


def flexible_clip_classifier(img_feat, txt_feat, params, mode="both",
                             *, matmul_dtype=jnp.bfloat16, batch_tile=None):
    """JAX wrapper reproducing FlexibleCLIPClassifier.forward (classifier head).

    img_feat, txt_feat : [B, projection_dim] float32 CLIP features (either may
                         be None when not needed by `mode`).
    params             : dict with w1 [D,256], b1 [256], w2 [256,3], b2 [3].
    matmul_dtype       : dtype of matmul operands (bf16 default; f32 for exact
                         parity). Accumulation is always f32.
    batch_tile         : optional batch tile size (auto-chosen if None).
    """
    if mode == "both":
        feats = (img_feat, txt_feat)
        kernel = _head_both_kernel
    elif mode == "image":
        feats = (img_feat,)
        kernel = _head_single_kernel
    elif mode == "text":
        feats = (txt_feat,)
        kernel = _head_single_kernel
    else:
        raise ValueError("Invalid mode")

    B, D = feats[0].shape
    H = params["w1"].shape[1]                 # 256
    C = params["w2"].shape[1]                 # 3

    sub = 8                                   # f32 feature tiles: 8-row sublanes
    if batch_tile is None:
        TB = _pick_batch_tile(B, sub)
    else:
        TB = max(sub, _round_up(min(batch_tile, B), sub))
    grid = pl.cdiv(B, TB)                     # ragged last block masked by Pallas

    # Feature (K) dim: pad to a 128 multiple ONLY if needed.  Standard CLIP
    # projection dims (512/768/1024) take the no-copy path: the f32 features
    # are handed to the kernel as-is and cast to bf16 inside it.
    Dp = D if D % 128 == 0 else _round_up(D, 128)
    if Dp != D:
        feats = tuple(jnp.pad(f, ((0, 0), (0, Dp - D))) for f in feats)
        w1 = jnp.pad(params["w1"], ((0, Dp - D), (0, 0)))
    else:
        w1 = params["w1"]

    Cp = _round_up(C, 128)                    # lane-dense padded class dim
    w1p = w1.astype(matmul_dtype)
    b1p = params["b1"].astype(jnp.float32).reshape(1, H)
    w2p = jnp.pad(params["w2"], ((0, 0), (0, Cp - C))).astype(matmul_dtype)
    b2p = jnp.pad(params["b2"], (0, Cp - C)).astype(jnp.float32).reshape(1, Cp)

    # Shrink the padded-output writeback: bf16 logits on the fast path (upcast
    # after the [:, :3] slice), f32 only for the exact-parity path.
    out_dtype = (jnp.float32
                 if jnp.dtype(matmul_dtype) == jnp.dtype(jnp.float32)
                 else jnp.bfloat16)

    feat_spec = pl.BlockSpec((TB, Dp), lambda i: (i, 0))
    out_spec = pl.BlockSpec((TB, Cp), lambda i: (i, 0))

    w_itemsize = jnp.dtype(matmul_dtype).itemsize
    out_itemsize = jnp.dtype(out_dtype).itemsize
    flops = 2 * B * Dp * H + 2 * B * H * Cp
    bytes_accessed = (4 * len(feats) * B * Dp            # f32 feature reads
                      + w_itemsize * (Dp * H + H * Cp)   # resident weights
                      + 4 * (H + Cp)                     # biases
                      + out_itemsize * B * Cp)           # logits writeback

    # VMEM actually needed: double-buffered feature tiles + out tiles + weights.
    vmem_need = (2 * len(feats) * TB * Dp * 4
                 + 2 * TB * Cp * out_itemsize
                 + 2 * w_itemsize * (Dp * H + H * Cp)
                 + 8 * (H + Cp))
    vmem_limit = int(min(96 * 1024 * 1024,
                         max(8 * 1024 * 1024, 2 * vmem_need)))

    def _call(single_buffer_weights):
        if single_buffer_weights:
            # Constant index_map -> the second pipeline buffer is dead VMEM.
            def wspec(shape):
                return pl.BlockSpec(shape, lambda i: (0, 0),
                                    pipeline_mode=pl.Buffered(1))
        else:
            def wspec(shape):
                return pl.BlockSpec(shape, lambda i: (0, 0))
        return pl.pallas_call(
            kernel,
            out_shape=jax.ShapeDtypeStruct((B, Cp), out_dtype),
            grid=(grid,),
            in_specs=[feat_spec] * len(feats) + [
                wspec((Dp, H)),      # w1 (resident across the grid)
                wspec((1, H)),       # b1
                wspec((H, Cp)),      # w2 (lane-dense padded)
                wspec((1, Cp)),      # b2
            ],
            out_specs=out_spec,
            compiler_params=pltpu.CompilerParams(
                dimension_semantics=("parallel",),   # shard batch tiles over TCs
                vmem_limit_bytes=vmem_limit,
            ),
            cost_estimate=pl.CostEstimate(
                flops=flops, transcendentals=0, bytes_accessed=bytes_accessed),
        )(*feats, w1p, b1p, w2p, b2p)

    try:
        out = _call(True)
    except Exception:
        # Fallback for JAX builds that reject Buffered(1) on pallas_call specs.
        out = _call(False)

    return out[:, :C].astype(jnp.float32)


def _reference(img_feat, txt_feat, params, mode="both"):
    if mode == "both":
        emb = (img_feat + txt_feat) / 2
    elif mode == "image":
        emb = img_feat
    else:
        emb = txt_feat
    h = jnp.maximum(emb @ params["w1"] + params["b1"], 0.0)
    return h @ params["w2"] + params["b2"]


if __name__ == "__main__":
    key = jax.random.PRNGKey(0)
    B = 2                 # batch
    D = 32                # clip.config.projection_dim (small synthetic value)
    H = 256               # classifier hidden width (fixed by the module)
    C = 3                 # number of classes (fixed by the module)

    k_img, k_txt, k_w1, k_b1, k_w2, k_b2 = jax.random.split(key, 6)

    # Synthetic CLIP projection features (stand-ins for get_image/text_features).
    img_feat = jax.random.normal(k_img, (B, D), dtype=jnp.float32)
    txt_feat = jax.random.normal(k_txt, (B, D), dtype=jnp.float32)

    params = {
        "w1": jax.random.normal(k_w1, (D, H), dtype=jnp.float32) * 0.02,
        "b1": jax.random.normal(k_b1, (H,), dtype=jnp.float32) * 0.02,
        "w2": jax.random.normal(k_w2, (H, C), dtype=jnp.float32) * 0.02,
        "b2": jax.random.normal(k_b2, (C,), dtype=jnp.float32) * 0.02,
    }

    ref_both = _reference(img_feat, txt_feat, params, "both")

    # 1) f32-operand path (module-parity numerics, up to MXU f32-pass ordering
    #    differences between the Mosaic and XLA matmul lowerings).
    out_f32 = jax.block_until_ready(
        flexible_clip_classifier(img_feat, txt_feat, params, mode="both",
                                 matmul_dtype=jnp.float32))
    assert out_f32.shape == (B, C)
    assert jnp.allclose(out_f32, ref_both, atol=2e-3, rtol=2e-3)

    # 2) Default fast path: bf16 matmul operands + bf16 writeback, f32 average
    #    / accumulation / epilogue inside the kernel.
    out_bf16 = jax.block_until_ready(
        flexible_clip_classifier(img_feat, txt_feat, params, mode="both"))
    assert out_bf16.shape == (B, C)
    assert jnp.allclose(out_bf16, ref_both, atol=2e-2, rtol=2e-2)

    # 3) Single-tower modes use the single-input kernel (half the input DMA).
    out_img = jax.block_until_ready(
        flexible_clip_classifier(img_feat, None, params, mode="image",
                                 matmul_dtype=jnp.float32))
    assert jnp.allclose(out_img, _reference(img_feat, txt_feat, params, "image"),
                        atol=2e-3, rtol=2e-3)
    out_txt = jax.block_until_ready(
        flexible_clip_classifier(None, txt_feat, params, mode="text",
                                 matmul_dtype=jnp.float32))
    assert jnp.allclose(out_txt, _reference(img_feat, txt_feat, params, "text"),
                        atol=2e-3, rtol=2e-3)

    # 4) Multi-step batch grid with a ragged last block and NO wrapper-side
    #    batch padding: B=20, tile=8 -> grid=3, last block masked by Pallas.
    B2 = 20
    k_i2, k_t2 = jax.random.split(jax.random.PRNGKey(1), 2)
    img2 = jax.random.normal(k_i2, (B2, D), dtype=jnp.float32)
    txt2 = jax.random.normal(k_t2, (B2, D), dtype=jnp.float32)
    out2 = jax.block_until_ready(
        flexible_clip_classifier(img2, txt2, params, mode="both",
                                 matmul_dtype=jnp.float32, batch_tile=8))
    assert out2.shape == (B2, C)
    assert jnp.allclose(out2, _reference(img2, txt2, params, "both"),
                        atol=2e-3, rtol=2e-3)

    print("KERNEL_OK")
</pallas_src>

<mosaic_0001>
module attributes {stable_mosaic.version = 11 : i64} {
  func.func @_head_both_kernel(%arg0: i32, %arg1: memref<8x128xf32, #tpu.memory_space<vmem>>, %arg2: memref<8x128xf32, #tpu.memory_space<vmem>>, %arg3: memref<128x256xf32, #tpu.memory_space<vmem>>, %arg4: memref<1x256xf32, #tpu.memory_space<vmem>>, %arg5: memref<256x128xf32, #tpu.memory_space<vmem>>, %arg6: memref<1x128xf32, #tpu.memory_space<vmem>>, %arg7: memref<8x128xf32, #tpu.memory_space<vmem>>) attributes {dimension_semantics = [#tpu.dimension_semantics<parallel>], iteration_bounds = array<i64: 1>, scalar_prefetch = 0 : i64, scratch_operands = 0 : i64, tpu.core_type = #tpu.core_type<tc>, window_params = [{transform_indices = @transform_0, window_bounds = array<i64: 8, 128>}, {transform_indices = @transform_1, window_bounds = array<i64: 8, 128>}, {pipeline_mode = #tpu.pipeline_mode<synchronous>, transform_indices = @transform_2, window_bounds = array<i64: 128, 256>}, {pipeline_mode = #tpu.pipeline_mode<synchronous>, transform_indices = @transform_3, window_bounds = array<i64: 1, 256>}, {pipeline_mode = #tpu.pipeline_mode<synchronous>, transform_indices = @transform_4, window_bounds = array<i64: 256, 128>}, {pipeline_mode = #tpu.pipeline_mode<synchronous>, transform_indices = @transform_5, window_bounds = array<i64: 1, 128>}, {transform_indices = @transform_6, window_bounds = array<i64: 8, 128>}]} {
    %c0 = arith.constant 0 : index
    %c0_0 = arith.constant 0 : index
    %0 = vector.load %arg1[%c0, %c0_0] : memref<8x128xf32, #tpu.memory_space<vmem>>, vector<8x128xf32>
    %c0_1 = arith.constant 0 : index
    %c0_2 = arith.constant 0 : index
    %1 = vector.load %arg2[%c0_1, %c0_2] : memref<8x128xf32, #tpu.memory_space<vmem>>, vector<8x128xf32>
    %2 = arith.addf %0, %1 : vector<8x128xf32>
    %cst = arith.constant 5.000000e-01 : f32
    %3 = vector.broadcast %cst : f32 to vector<8x128xf32>
    %4 = arith.mulf %2, %3 : vector<8x128xf32>
    %c0_3 = arith.constant 0 : index
    %c0_4 = arith.constant 0 : index
    %5 = vector.load %arg3[%c0_3, %c0_4] : memref<128x256xf32, #tpu.memory_space<vmem>>, vector<128x256xf32>
    %cst_5 = arith.constant dense<0.000000e+00> : vector<8x256xf32>
    %6 = tpu.matmul %4, %5, %cst_5 {dimension_numbers = #tpu.dot_dimension_numbers<[1], [0], [0], [1], [0, 0, 1, 1], [], []>} : vector<8x128xf32>, vector<128x256xf32>, vector<8x256xf32> -> vector<8x256xf32>
    %c0_6 = arith.constant 0 : index
    %c0_7 = arith.constant 0 : index
    %7 = vector.load %arg4[%c0_6, %c0_7] : memref<1x256xf32, #tpu.memory_space<vmem>>, vector<1x256xf32>
    %8 = vector.broadcast %7 : vector<1x256xf32> to vector<8x256xf32>
    %9 = arith.addf %6, %8 : vector<8x256xf32>
    %cst_8 = arith.constant 0.000000e+00 : f32
    %10 = vector.broadcast %cst_8 : f32 to vector<8x256xf32>
    %11 = arith.maximumf %9, %10 : vector<8x256xf32>
    %c0_9 = arith.constant 0 : index
    %c0_10 = arith.constant 0 : index
    %12 = vector.load %arg5[%c0_9, %c0_10] : memref<256x128xf32, #tpu.memory_space<vmem>>, vector<256x128xf32>
    %cst_11 = arith.constant dense<0.000000e+00> : vector<8x128xf32>
    %13 = tpu.matmul %11, %12, %cst_11 {dimension_numbers = #tpu.dot_dimension_numbers<[1], [0], [0], [1], [0, 0, 1, 1], [], []>} : vector<8x256xf32>, vector<256x128xf32>, vector<8x128xf32> -> vector<8x128xf32>
    %c0_12 = arith.constant 0 : index
    %c0_13 = arith.constant 0 : index
    %14 = vector.load %arg6[%c0_12, %c0_13] : memref<1x128xf32, #tpu.memory_space<vmem>>, vector<1x128xf32>
    %15 = vector.broadcast %14 : vector<1x128xf32> to vector<8x128xf32>
    %16 = arith.addf %13, %15 : vector<8x128xf32>
    %c0_14 = arith.constant 0 : index
    %c0_15 = arith.constant 0 : index
    %17 = vector.load %arg7[%c0_14, %c0_15] : memref<8x128xf32, #tpu.memory_space<vmem>>, vector<8x128xf32>
    tpu.vector_store %arg7[%c0_14, %c0_15], %16 {strides = array<i32>} : memref<8x128xf32, #tpu.memory_space<vmem>>, vector<8x128xf32>,
    return
  }
  func.func @transform_0(%arg0: i32) -> (i32, i32) {
    %c0_i32 = arith.constant 0 : i32
    %c0_i32_0 = arith.constant 0 : i32
    return %arg0, %c0_i32 : i32, i32
  }
  func.func @transform_1(%arg0: i32) -> (i32, i32) {
    %c0_i32 = arith.constant 0 : i32
    %c0_i32_0 = arith.constant 0 : i32
    return %arg0, %c0_i32 : i32, i32
  }
  func.func @transform_2(%arg0: i32) -> (i32, i32) {
    %c0_i32 = arith.constant 0 : i32
    %c0_i32_0 = arith.constant 0 : i32
    %c0_i32_1 = arith.constant 0 : i32
    return %c0_i32, %c0_i32_0 : i32, i32
  }
  func.func @transform_3(%arg0: i32) -> (i32, i32) {
    %c0_i32 = arith.constant 0 : i32
    %c0_i32_0 = arith.constant 0 : i32
    %c0_i32_1 = arith.constant 0 : i32
    return %c0_i32, %c0_i32_0 : i32, i32
  }
  func.func @transform_4(%arg0: i32) -> (i32, i32) {
    %c0_i32 = arith.constant 0 : i32
    %c0_i32_0 = arith.constant 0 : i32
    %c0_i32_1 = arith.constant 0 : i32
    return %c0_i32, %c0_i32_0 : i32, i32
  }
  func.func @transform_5(%arg0: i32) -> (i32, i32) {
    %c0_i32 = arith.constant 0 : i32
    %c0_i32_0 = arith.constant 0 : i32
    %c0_i32_1 = arith.constant 0 : i32
    return %c0_i32, %c0_i32_0 : i32, i32
  }
  func.func @transform_6(%arg0: i32) -> (i32, i32) {
    %c0_i32 = arith.constant 0 : i32
    %c0_i32_0 = arith.constant 0 : i32
    return %arg0, %c0_i32 : i32, i32
  }
}

module attributes {stable_mosaic.version = 11 : i64} {
  func.func @_head_both_kernel(%arg0: i32, %arg1: memref<8x128xf32, #tpu.memory_space<vmem>>, %arg2: memref<8x128xf32, #tpu.memory_space<vmem>>, %arg3: memref<128x256xf32, #tpu.memory_space<vmem>>, %arg4: memref<1x256xf32, #tpu.memory_space<vmem>>, %arg5: memref<256x128xf32, #tpu.memory_space<vmem>>, %arg6: memref<1x128xf32, #tpu.memory_space<vmem>>, %arg7: memref<8x128xf32, #tpu.memory_space<vmem>>) attributes {dimension_semantics = [#tpu.dimension_semantics<parallel>], iteration_bounds = array<i64: 1>, scalar_prefetch = 0 : i64, scratch_operands = 0 : i64, tpu.core_type = #tpu.core_type<tc>, window_params = [{transform_indices = @transform_0, window_bounds = array<i64: 8, 128>}, {transform_indices = @transform_1, window_bounds = array<i64: 8, 128>}, {pipeline_mode = #tpu.pipeline_mode<synchronous>, transform_indices = @transform_2, window_bounds = array<i64: 128, 256>}, {pipeline_mode = #tpu.pipeline_mode<synchronous>, transform_indices = @transform_3, window_bounds = array<i64: 1, 256>}, {pipeline_mode = #tpu.pipeline_mode<synchronous>, transform_indices = @transform_4, window_bounds = array<i64: 256, 128>}, {pipeline_mode = #tpu.pipeline_mode<synchronous>, transform_indices = @transform_5, window_bounds = array<i64: 1, 128>}, {transform_indices = @transform_6, window_bounds = array<i64: 8, 128>}]} {
    %c0 = arith.constant 0 : index
    %c0_0 = arith.constant 0 : index
    %0 = vector.load %arg1[%c0, %c0_0] : memref<8x128xf32, #tpu.memory_space<vmem>>, vector<8x128xf32>
    %c0_1 = arith.constant 0 : index
    %c0_2 = arith.constant 0 : index
    %1 = vector.load %arg2[%c0_1, %c0_2] : memref<8x128xf32, #tpu.memory_space<vmem>>, vector<8x128xf32>
    %2 = arith.addf %0, %1 : vector<8x128xf32>
    %cst = arith.constant 5.000000e-01 : f32
    %3 = vector.broadcast %cst : f32 to vector<8x128xf32>
    %4 = arith.mulf %2, %3 : vector<8x128xf32>
    %c0_3 = arith.constant 0 : index
    %c0_4 = arith.constant 0 : index
    %5 = vector.load %arg3[%c0_3, %c0_4] : memref<128x256xf32, #tpu.memory_space<vmem>>, vector<128x256xf32>
    %cst_5 = arith.constant dense<0.000000e+00> : vector<8x256xf32>
    %6 = tpu.matmul %4, %5, %cst_5 {dimension_numbers = #tpu.dot_dimension_numbers<[1], [0], [0], [1], [0, 0, 1, 1], [], []>} : vector<8x128xf32>, vector<128x256xf32>, vector<8x256xf32> -> vector<8x256xf32>
    %c0_6 = arith.constant 0 : index
    %c0_7 = arith.constant 0 : index
    %7 = vector.load %arg4[%c0_6, %c0_7] : memref<1x256xf32, #tpu.memory_space<vmem>>, vector<1x256xf32>
    %8 = vector.broadcast %7 : vector<1x256xf32> to vector<8x256xf32>
    %9 = arith.addf %6, %8 : vector<8x256xf32>
    %cst_8 = arith.constant 0.000000e+00 : f32
    %10 = vector.broadcast %cst_8 : f32 to vector<8x256xf32>
    %11 = arith.maximumf %9, %10 : vector<8x256xf32>
    %c0_9 = arith.constant 0 : index
    %c0_10 = arith.constant 0 : index
    %12 = vector.load %arg5[%c0_9, %c0_10] : memref<256x128xf32, #tpu.memory_space<vmem>>, vector<256x128xf32>
    %cst_11 = arith.constant dense<0.000000e+00> : vector<8x128xf32>
    %13 = tpu.matmul %11, %12, %cst_11 {dimension_numbers = #tpu.dot_dimension_numbers<[1], [0], [0], [1], [0, 0, 1, 1], [], []>} : vector<8x256xf32>, vector<256x128xf32>, vector<8x128xf32> -> vector<8x128xf32>
    %c0_12 = arith.constant 0 : index
    %c0_13 = arith.constant 0 : index
    %14 = vector.load %arg6[%c0_12, %c0_13] : memref<1x128xf32, #tpu.memory_space<vmem>>, vector<1x128xf32>
    %15 = vector.broadcast %14 : vector<1x128xf32> to vector<8x128xf32>
    %16 = arith.addf %13, %15 : vector<8x128xf32>
    %c0_14 = arith.constant 0 : index
    %c0_15 = arith.constant 0 : index
    %17 = vector.load %arg7[%c0_14, %c0_15] : memref<8x128xf32, #tpu.memory_space<vmem>>, vector<8x128xf32>
    tpu.vector_store %arg7[%c0_14, %c0_15], %16 {strides = array<i32>} : memref<8x128xf32, #tpu.memory_space<vmem>>, vector<8x128xf32>,
    return
  }
  func.func @transform_0(%arg0: i32) -> (i32, i32) {
    %c0_i32 = arith.constant 0 : i32
    %c0_i32_0 = arith.constant 0 : i32
    return %arg0, %c0_i32 : i32, i32
  }
  func.func @transform_1(%arg0: i32) -> (i32, i32) {
    %c0_i32 = arith.constant 0 : i32
    %c0_i32_0 = arith.constant 0 : i32
    return %arg0, %c0_i32 : i32, i32
  }
  func.func @transform_2(%arg0: i32) -> (i32, i32) {
    %c0_i32 = arith.constant 0 : i32
    %c0_i32_0 = arith.constant 0 : i32
    %c0_i32_1 = arith.constant 0 : i32
    return %c0_i32, %c0_i32_0 : i32, i32
  }
  func.func @transform_3(%arg0: i32) -> (i32, i32) {
    %c0_i32 = arith.constant 0 : i32
    %c0_i32_0 = arith.constant 0 : i32
    %c0_i32_1 = arith.constant 0 : i32
    return %c0_i32, %c0_i32_0 : i32, i32
  }
  func.func @transform_4(%arg0: i32) -> (i32, i32) {
    %c0_i32 = arith.constant 0 : i32
    %c0_i32_0 = arith.constant 0 : i32
    %c0_i32_1 = arith.constant 0 : i32
    return %c0_i32, %c0_i32_0 : i32, i32
  }
  func.func @transform_5(%arg0: i32) -> (i32, i32) {
    %c0_i32 = arith.constant 0 : i32
    %c0_i32_0 = arith.constant 0 : i32
    %c0_i32_1 = arith.constant 0 : i32
    return %c0_i32, %c0_i32_0 : i32, i32
  }
  func.func @transform_6(%arg0: i32) -> (i32, i32) {
    %c0_i32 = arith.constant 0 : i32
    %c0_i32_0 = arith.constant 0 : i32
    return %arg0, %c0_i32 : i32, i32
  }
}

</mosaic_0001>

<bundles_post_ra>
// kernel: tpu_custom_call.1
= control target key start
LH: loop header
LB: loop body
LE: loop exit
PB: predicated region body
PF: predicated region fallthrough
CT: control target
= control target key end

     0   :  { %11 = vsyncpa [#allocation3], 0  ;;  %s628_s0 = inlined_call_operand.hbm [shape: f32[2,128], index: 0, kind: input, shape index: {}]   ;;  %s629_s1 = inlined_call_operand.vmem [shape: f32[2,128], index: 1, kind: input, shape index: {}]   ;;  %s630_s2 = inlined_call_operand.hbm [shape: f32[128,256], index: 2, kind: input, shape index: {}]   ;;  %s631_s3 = inlined_call_operand.vmem [shape: f32[1,256], index: 3, kind: input, shape index: {}]   ;;  %s632_s4 = inlined_call_operand.hbm [shape: f32[256,128], index: 4, kind: input, shape index: {}]   ;;  %s633_s5 = inlined_call_operand.vmem [shape: f32[1,128], index: 5, kind: input, shape index: {}]   ;;  %s634_s6 = inlined_call_operand.hbm [shape: f32[2,128], index: 6, kind: output, shape index: {}]  }
   0x1   :  { %12 = vsyncpa [#allocation6], 0 }
   0x2   :  { %13 = vsyncpa [#allocation4], 0 }
   0x3   :  { %18 = vsyncadd [#allocation3], 96  ;;  %s519_s21 = smov [#allocation5]   ;;  %s425_s25 = scalar_lea.hbm %s630_s2, 4096 }
   0x4   :  { %s33_s22 = sshll.u32 %s519_s21, 4  ;;  %p426_p0 = scmp.ne.s32.totalorder %s630_s2, %s425_s25  ;;  %s34_s22 = int_to_ptr.vmem [resolvable:$true] %s33_s22 }
   0x5   :  { %p429_p1 = scmp.lt.u32.totalorder %s425_s25, %s630_s2 }
   0x7   :  { %p431_p2 = pnand %p429_p1, %p426_p0 }
   0x9   :  { %434 = shalt.err (!%p431_p2)
}
   0xa   :  { %s435_s30 = scalar_lea.vmem %s34_s22, 4096  ;;  %p440_p4 = scmp.lt.s32.totalorder %s34_s22, %s34_s22 }
   0xb   :  { %p436_p3 = scmp.ne.s32.totalorder %s34_s22, %s435_s30  ;;  %p441_p5 = scmp.lt.s32.totalorder %s435_s30, %s435_s30 }
   0xd   :  { %p442_p6 = por %p441_p5, %p440_p4 }
   0xf   :  { %p443_p7 = pnand %p442_p6, %p436_p3 }
  0x11   :  { %446 = shalt.err (!%p443_p7)
}
  0x12   :  { %s520_s7 = smov 256   ;;  %s521_s8 = smov 16  }
  0x13   :  { %39 = dma.hbm_to_vmem [thread:$0]  %s630_s2, 4096, %s34_s22, [#allocation6], %s520_s7, %s520_s7, %s521_s8  }
  0x14   :  { %s522_s11 = smov [#allocation2]   ;;  %s447_s15 = scalar_lea.hbm %s628_s0, 32 }
  0x15   :  { %s19_s12 = sshll.u32 %s522_s11, 4  ;;  %p448_p8 = scmp.ne.s32.totalorder %s628_s0, %s447_s15  ;;  %s20_s12 = int_to_ptr.vmem [resolvable:$true] %s19_s12 }
  0x16   :  { %p451_p9 = scmp.lt.u32.totalorder %s447_s15, %s628_s0 }
  0x18   :  { %p453_p10 = pnand %p451_p9, %p448_p8 }
  0x1a   :  { %456 = shalt.err (!%p453_p10)
}
  0x1b   :  { %s457_s20 = scalar_lea.vmem %s20_s12, 32  ;;  %s461_s2 = scalar_lea.vmem %s20_s12, 128 }
  0x1c   :  { %p458_p11 = scmp.ne.s32.totalorder %s20_s12, %s457_s20  ;;  %p462_p12 = scmp.lt.s32.totalorder %s20_s12, %s20_s12 }
  0x1d   :  { %p463_p13 = scmp.lt.s32.totalorder %s461_s2, %s457_s20 }
  0x1f   :  { %p464_p0 = por %p463_p13, %p462_p12 }
  0x21   :  { %p465_p1 = pnand %p464_p0, %p458_p11 }
  0x23   :  { %468 = shalt.err (!%p465_p1)
}
  0x24   :  { %s523_s21 = smov 32   ;;  %s524_s22 = smov 2  }
  0x25   :  { %25 = dma.hbm_to_vmem [thread:$0]  %s628_s0, 32, %s20_s12, [#allocation3], %s523_s21, %s523_s21, %s524_s22  }
  0x26   :  { %s525_s25 = smov [#allocation7]   ;;  %s469_s29 = scalar_lea.hbm %s632_s4, 4096 }
  0x27   :  { %s47_s26 = sshll.u32 %s525_s25, 4  ;;  %p470_p2 = scmp.ne.s32.totalorder %s632_s4, %s469_s29  ;;  %s48_s26 = int_to_ptr.vmem [resolvable:$true] %s47_s26 }
  0x28   :  { %p473_p3 = scmp.lt.u32.totalorder %s469_s29, %s632_s4 }
  0x2a   :  { %p475_p4 = pnand %p473_p3, %p470_p2 }
  0x2c   :  { %478 = shalt.err (!%p475_p4)
}
  0x2d   :  { %s479_s10 = scalar_lea.vmem %s48_s26, 4096  ;;  %p484_p6 = scmp.lt.s32.totalorder %s48_s26, %s48_s26 }
  0x2e   :  { %p480_p5 = scmp.ne.s32.totalorder %s48_s26, %s479_s10  ;;  %p485_p7 = scmp.lt.s32.totalorder %s479_s10, %s479_s10 }
  0x30   :  { %p486_p8 = por %p485_p7, %p484_p6 }
  0x32   :  { %p487_p9 = pnand %p486_p8, %p480_p5 }
  0x34   :  { %490 = shalt.err (!%p487_p9)
}
  0x35   :  { %s526_s0 = smov 128   ;;  %s527_s11 = smov 8  }
  0x36   :  { %53 = dma.hbm_to_vmem [thread:$0]  %s632_s4, 4096, %s48_s26, [#allocation6], %s526_s0, %s526_s0, %s527_s11  }
  0x37   :  { %513 = dma.done.wait [#allocation3], 128  }
  0x38   :  { %514 = vsyncadd [#allocation3], 4294967168 }
  0x39   :  { %515 = dma.done.wait [#allocation6], 8192  }
  0x3a   :  { %516 = vsyncadd [#allocation6], 4294959104  ;;  %v528_v0 = vmov 0.0   ;;  %v70_v1 = vld [vmem:[#allocation5 + $0x8] sm:$0xff]  ;;  %v72_v2 = vld [vmem:[#allocation5 + $0x18] sm:$0xff] }
  0x3b   :  { %177 = vmatprep.mubr.f32.mxu0 %v528_v0  ;;  %v69_v3 = vld [vmem:[#allocation5] sm:$0xff]  ;;  %v350_v4 = vpack.c.bf16 %v72_v2, %v70_v1  ;;  %v71_v5 = vld [vmem:[#allocation5 + $0x10] sm:$0xff]  ;;  %v74_v6 = vld [vmem:[#allocation5 + $0x28] sm:$0xff] }
  0x3c   :  { %v76_v7 = vld [vmem:[#allocation5 + $0x38] sm:$0xff]  ;;  %v352_v8 = vpack.c.bf16 %v71_v5, %v69_v3  ;;  %v73_v10 = vld [vmem:[#allocation5 + $0x20] sm:$0xff]  ;;  %v75_v11 = vld [vmem:[#allocation5 + $0x30] sm:$0xff] }
  0x3d   :  { %v354_v9 = vpack.c.bf16 %v76_v7, %v74_v6  ;;  %v78_v12 = vld [vmem:[#allocation5 + $0x48] sm:$0xff]  ;;  %351 = vmatprep.subr.bf16.mxu0 %v350_v4  ;;  %v80_v13 = vld [vmem:[#allocation5 + $0x58] sm:$0xff]  ;;  %v356_v14 = vpack.c.bf16 %v75_v11, %v73_v10  ;;  %v77_v16 = vld [vmem:[#allocation5 + $0x40] sm:$0xff] }
  0x3e   :  { %353 = vmatpush1.bf16.msra.mxu0 %v352_v8  ;;  %v358_v15 = vpack.c.bf16 %v80_v13, %v78_v12  ;;  %v79_v17 = vld [vmem:[#allocation5 + $0x50] sm:$0xff]  ;;  %v82_v18 = vld [vmem:[#allocation5 + $0x68] sm:$0xff]  ;;  %v84_v19 = vld [vmem:[#allocation5 + $0x78] sm:$0xff] }
  0x3f   :  { %355 = vmatprep.subr.bf16.mxu0 %v354_v9  ;;  %v360_v20 = vpack.c.bf16 %v79_v17, %v77_v16  ;;  %v362_v21 = vpack.c.bf16 %v84_v19, %v82_v18  ;;  %v81_v22 = vld [vmem:[#allocation5 + $0x60] sm:$0xff]  ;;  %v83_v23 = vld [vmem:[#allocation5 + $0x70] sm:$0xff]  ;;  %v86_v24 = vld [vmem:[#allocation5 + $0x88] sm:$0xff] }
  0x40   :  { %v88_v25 = vld [vmem:[#allocation5 + $0x98] sm:$0xff]  ;;  %v85_v26 = vld [vmem:[#allocation5 + $0x80] sm:$0xff]  ;;  %v87_v27 = vld [vmem:[#allocation5 + $0x90] sm:$0xff]  ;;  %v364_v30 = vpack.c.bf16 %v83_v23, %v81_v22 }
  0x41   :  { %v202_v28 = vld [vmem:[#allocation7 + $0x80] sm:$0xff]  ;;  %v203_v29 = vld [vmem:[#allocation7 + $0x88] sm:$0xff]  ;;  %v204_v35 = vld [vmem:[#allocation7 + $0x90] sm:$0xff]  ;;  %v366_v36 = vpack.c.bf16 %v88_v25, %v86_v24  ;;  %v368_v46 = vpack.c.bf16 %v87_v27, %v85_v26 }
  0x42   :  { %357 = vmatpush1.bf16.msra.mxu0 %v356_v14  ;;  %v90_v31 = vld [vmem:[#allocation5 + $0xa8] sm:$0xff]  ;;  %v382_v32 = vpack.c.bf16 %v203_v29, %v202_v28  ;;  %v186_v33 = vld [vmem:[#allocation7] sm:$0xff]  ;;  %v205_v38 = vld [vmem:[#allocation7 + $0x98] sm:$0xff] }
  0x43   :  { %359 = vmatprep.subr.bf16.mxu0 %v358_v15  ;;  %v187_v34 = vld [vmem:[#allocation7 + $0x8] sm:$0xff]  ;;  %v188_v39 = vld [vmem:[#allocation7 + $0x10] sm:$0xff]  ;;  %v189_v40 = vld [vmem:[#allocation7 + $0x18] sm:$0xff]  ;;  %v386_v42 = vpack.c.bf16 %v205_v38, %v204_v35 }
  0x44   :  { %v384_v37 = vpack.c.bf16 %v187_v34, %v186_v33  ;;  %v92_v41 = vld [vmem:[#allocation5 + $0xb8] sm:$0xff]  ;;  %383 = vmatprep.subr.bf16.mxu1 %v382_v32  ;;  %v206_v43 = vld [vmem:[#allocation7 + $0xa0] sm:$0xff]  ;;  %v207_v44 = vld [vmem:[#allocation7 + $0xa8] sm:$0xff]  ;;  %v388_v45 = vpack.c.bf16 %v189_v40, %v188_v39 }
  0x45   :  { %v89_v47 = vld [vmem:[#allocation5 + $0xa0] sm:$0xff]  ;;  %v390_v48 = vpack.c.bf16 %v207_v44, %v206_v43  ;;  %v191_v50 = vld [vmem:[#allocation7 + $0x28] sm:$0xff]  ;;  %v370_v51 = vpack.c.bf16 %v92_v41, %v90_v31  ;;  %v91_v52 = vld [vmem:[#allocation5 + $0xb0] sm:$0xff] }
  0x46   :  { %361 = vmatpush1.bf16.msra.mxu0 %v360_v20  ;;  %385 = vmatpush3.bf16.msra.mxu1 %v384_v37  ;;  %v190_v49 = vld [vmem:[#allocation7 + $0x20] sm:$0xff]  ;;  %v208_v53 = vld [vmem:[#allocation7 + $0xb0] sm:$0xff]  ;;  %v209_v54 = vld [vmem:[#allocation7 + $0xb8] sm:$0xff]  ;;  %v372_v58 = vpack.c.bf16 %v91_v52, %v89_v47  ;;  %v103_v37 = vlaneseq }
  0x47   :  { %363 = vmatprep.subr.bf16.mxu0 %v362_v21  ;;  %387 = vmatprep.subr.bf16.mxu1 %v386_v42  ;;  %v94_v55 = vld [vmem:[#allocation5 + $0xc8] sm:$0xff]  ;;  %v96_v56 = vld [vmem:[#allocation5 + $0xd8] sm:$0xff]  ;;  %v392_v57 = vpack.c.bf16 %v191_v50, %v190_v49  ;;  %v93_v59 = vld [vmem:[#allocation5 + $0xc0] sm:$0xff]  ;;  %v394_v60 = vpack.c.bf16 %v209_v54, %v208_v53 }
  0x48   :  { %v192_v61 = vld [vmem:[#allocation7 + $0x30] sm:$0xff]  ;;  %v193_v62 = vld [vmem:[#allocation7 + $0x38] sm:$0xff]  ;;  %v374_v63 = vpack.c.bf16 %v96_v56, %v94_v55  ;;  %v210_v1 = vld [vmem:[#allocation7 + $0xc0] sm:$0xff]  ;;  %v104_v38 = vshrl.u32 %v103_v37, 7 }
  0x49   :  { %v95_v0 = vld [vmem:[#allocation5 + $0xd0] sm:$0xff]  ;;  %v211_v2 = vld [vmem:[#allocation7 + $0xc8] sm:$0xff]  ;;  %v100_v4 = vld [vmem:[#allocation5 + $0xf8] sm:$0xff]  ;;  %v396_v7 = vpack.c.bf16 %v193_v62, %v192_v61 }
  0x4a   :  { %365 = vmatpush1.bf16.msra.mxu0 %v364_v30  ;;  %389 = vmatpush3.bf16.msra.mxu1 %v388_v45  ;;  %v98_v3 = vld [vmem:[#allocation5 + $0xe8] sm:$0xff]  ;;  %v97_v5 = vld [vmem:[#allocation5 + $0xe0] sm:$0xff]  ;;  %v65_v6 = vld [vmem:[#allocation2] sm:$0xff]  ;;  %v376_v8 = vpack.c.bf16 %v95_v0, %v93_v59  ;;  %v398_v10 = vpack.c.bf16 %v211_v2, %v210_v1  ;;  %v105_v39 = vsub.s32 0, %v104_v38  ;;  %v109_v41 = vsub.s32 1, %v104_v38 }
  0x4b   :  { %367 = vmatprep.subr.bf16.mxu0 %v366_v36  ;;  %391 = vmatprep.subr.bf16.mxu1 %v390_v48  ;;  %v66_v9 = vld [vmem:[%s629_s1] sm:$0xff]  ;;  %v194_v11 = vld [vmem:[#allocation7 + $0x40] sm:$0xff]  ;;  %v195_v12 = vld [vmem:[#allocation7 + $0x48] sm:$0xff]  ;;  %v378_v13 = vpack.c.bf16 %v100_v4, %v98_v3 }
  0x4c   :  { %v99_v14 = vld [vmem:[#allocation5 + $0xf0] sm:$0xff]  ;;  %v213_v16 = vld [vmem:[#allocation7 + $0xd8] sm:$0xff]  ;;  %v67_v17 = vadd.f32 %v66_v9, %v65_v6  ;;  %v400_v18 = vpack.c.bf16 %v195_v12, %v194_v11  ;;  %v214_v23 = vld [vmem:[#allocation7 + $0xe0] sm:$0xff] }
  0x4d   :  { %v212_v15 = vld [vmem:[#allocation7 + $0xd0] sm:$0xff]  ;;  %v380_v19 = vpack.c.bf16 %v99_v14, %v97_v5  ;;  %v197_v22 = vld [vmem:[#allocation7 + $0x58] sm:$0xff]  ;;  %v215_v24 = vld [vmem:[#allocation7 + $0xe8] sm:$0xff] }
  0x4e   :  { %369 = vmatpush1.bf16.msra.mxu0 %v368_v46  ;;  %393 = vmatpush3.bf16.msra.mxu1 %v392_v57  ;;  %v402_v20 = vpack.c.bf16 %v213_v16, %v212_v15  ;;  %v196_v21 = vld [vmem:[#allocation7 + $0x50] sm:$0xff]  ;;  %v68_v25 = vmul.f32 0.5, %v67_v17  ;;  %v406_v27 = vpack.c.bf16 %v215_v24, %v214_v23  ;;  %v198_v28 = vld [vmem:[#allocation7 + $0x60] sm:$0xff]  ;;  %v199_v29 = vld [vmem:[#allocation7 + $0x68] sm:$0xff] }
  0x4f   :  { %371 = vmatprep.subr.bf16.mxu0 %v370_v51  ;;  %395 = vmatprep.subr.bf16.mxu1 %v394_v60  ;;  %v404_v26 = vpack.c.bf16 %v197_v22, %v196_v21  ;;  %v408_v30 = vpack.c.bf16 %v199_v29, %v198_v28  ;;  %v216_v31 = vld [vmem:[#allocation7 + $0xf0] sm:$0xff]  ;;  %v217_v32 = vld [vmem:[#allocation7 + $0xf8] sm:$0xff] }
  0x50   :  { %v410_v33 = vpack.c.bf16 %v217_v32, %v216_v31  ;;  %v200_v34 = vld [vmem:[#allocation7 + $0x70] sm:$0xff]  ;;  %v201_v35 = vld [vmem:[#allocation7 + $0x78] sm:$0xff] }
  0x51   :  { %v412_v36 = vpack.c.bf16 %v201_v35, %v200_v34  ;;  %v101_v40 = vld [vmem:[%s631_s3] sm:$0x3] }
  0x52   :  { %373 = vmatpush1.bf16.msra.mxu0 %v372_v58  ;;  %397 = vmatpush3.bf16.msra.mxu1 %v396_v7  ;;  %v106_v42 = vrot.slane %v101_v40, %v105_v39  ;;  %v110_v43 = vrot.slane %v101_v40, %v109_v41  ;;  %v314_v51 = vld [vmem:[%s633_s5] ss:$0 sm:$0xff] }
  0x53   :  { %375 = vmatprep.subr.bf16.mxu0 %v374_v63  ;;  %399 = vmatprep.subr.bf16.mxu1 %v398_v10 }
  0x56   :  { %377 = vmatpush1.bf16.msra.mxu0 %v376_v8  ;;  %401 = vmatpush3.bf16.msra.mxu1 %v400_v18 }
  0x57   :  { %379 = vmatprep.subr.bf16.mxu0 %v378_v13  ;;  %403 = vmatprep.subr.bf16.mxu1 %v402_v20 }
  0x5a   :  { %381 = vmatpush1.bf16.msra.mxu0 %v380_v19  ;;  %405 = vmatpush3.bf16.msra.mxu1 %v404_v26 }
  0x5b   :  { %407 = vmatprep.subr.bf16.mxu1 %v406_v27 }
  0x5d   :  { %178 = vmatmul.mubr.f32.vlgmr.msra.gmra.mrb[0].mxu0 %v68_v25 }
  0x5e   :  { %409 = vmatpush3.bf16.msra.mxu1 %v408_v30 }
  0x5f   :  { %411 = vmatprep.subr.bf16.mxu1 %v410_v33 }
  0x62   :  { %413 = vmatpush3.bf16.msra.mxu1 %v412_v36 }
 0x130   :  { %v179_v44 = vpop.f32.mrb[0].mxu0 }
 0x131   :  { %v180_v45 = vadd.f32 %v179_v44, %v106_v42  ;;  %v181_v46 = vpop.f32.mrb[1].mxu0 }
 0x132   :  { %v182_v47 = vadd.f32 %v181_v46, %v110_v43 }
 0x133   :  { %v184_v49 = vmax.f32 %v180_v45, 0.0 }
 0x134   :  { %v185_v48 = vmax.f32 %v182_v47, 0.0 }
 0x136   :  { %289 = vmatprep.mubr.f32.mxu1 %v185_v48 }
 0x137   :  { %290 = vmatmul.mubr.f32.vlgmr.msra.gmra.mrb[0].mxu1 %v184_v49 }
 0x20a   :  { %v347_v50 = vpop.f32.mrb[0].mxu1 }
 0x20b   :  { %v348_v52 = vpop.f32.mrb[1].mxu1 }
 0x20c   :  { %v349_v53 = vadd.f32 %v348_v52, %v347_v50 }
 0x20e   :  { %v292_v54 = vadd.f32 %v349_v53, %v314_v51 }
 0x210   :  { %295 = vst [vmem:[#allocation8] sm:$0xff] %v292_v54 }
 0x211   :  { %300 = vsyncadd [#allocation4], 96  ;;  %s529_s3 = smov [#allocation8]  }
 0x212   :  { %s301_s18 = sshll.u32 %s529_s3, 4  ;;  %s302_s18 = int_to_ptr.vmem [resolvable:$true] %s301_s18 }
 0x213   :  { %s491_s19 = scalar_lea.vmem %s302_s18, 32  ;;  %s495_s20 = scalar_lea.vmem %s302_s18, 128 }
 0x214   :  { %p492_p10 = scmp.ne.s32.totalorder %s302_s18, %s491_s19  ;;  %p496_p11 = scmp.lt.s32.totalorder %s302_s18, %s302_s18 }
 0x215   :  { %p497_p12 = scmp.lt.s32.totalorder %s495_s20, %s491_s19 }
 0x217   :  { %p498_p13 = por %p497_p12, %p496_p11 }
 0x219   :  { %p499_p0 = pnand %p498_p13, %p492_p10 }
 0x21b   :  { %502 = shalt.err (!%p499_p0)
}
 0x21c   :  { %s503_s5 = scalar_lea.hbm %s634_s6, 32 }
 0x21d   :  { %p504_p1 = scmp.ne.s32.totalorder %s634_s6, %s503_s5  ;;  %p507_p2 = scmp.lt.u32.totalorder %s503_s5, %s634_s6 }
 0x21f   :  { %p509_p3 = pnand %p507_p2, %p504_p1 }
 0x221   :  { %512 = shalt.err (!%p509_p3)
}
 0x222   :  { %307 = dma.vmem_to_hbm [thread:$0]  %s302_s18, 32, %s634_s6, [#allocation4], %s523_s21, %s523_s21, %s524_s22  }
 0x223   :  { %517 = dma.done.wait [#allocation4], 128  }
 0x224   :  { %518 = vsyncadd [#allocation4], 4294967168 }
 0x225   :  { %311 = vsyncpa [#allocation3], 1 }
 0x226   :  { %312 = vsyncpa [#allocation6], 1 }
 0x227   :  { %313 = vsyncpa [#allocation4], 1 }

// kernel: tpu_custom_call.1
= control target key start
LH: loop header
LB: loop body
LE: loop exit
PB: predicated region body
PF: predicated region fallthrough
CT: control target
= control target key end

     0   :  { %11 = vsyncpa [#allocation3], 0  ;;  %s628_s0 = inlined_call_operand.hbm [shape: f32[2,128], index: 0, kind: input, shape index: {}]   ;;  %s629_s1 = inlined_call_operand.vmem [shape: f32[2,128], index: 1, kind: input, shape index: {}]   ;;  %s630_s2 = inlined_call_operand.hbm [shape: f32[128,256], index: 2, kind: input, shape index: {}]   ;;  %s631_s3 = inlined_call_operand.vmem [shape: f32[1,256], index: 3, kind: input, shape index: {}]   ;;  %s632_s4 = inlined_call_operand.hbm [shape: f32[256,128], index: 4, kind: input, shape index: {}]   ;;  %s633_s5 = inlined_call_operand.vmem [shape: f32[1,128], index: 5, kind: input, shape index: {}]   ;;  %s634_s6 = inlined_call_operand.hbm [shape: f32[2,128], index: 6, kind: output, shape index: {}]  }
   0x1   :  { %12 = vsyncpa [#allocation6], 0 }
   0x2   :  { %13 = vsyncpa [#allocation4], 0 }
   0x3   :  { %18 = vsyncadd [#allocation3], 96  ;;  %s519_s21 = smov [#allocation5]   ;;  %s425_s25 = scalar_lea.hbm %s630_s2, 4096 }
   0x4   :  { %s33_s22 = sshll.u32 %s519_s21, 4  ;;  %p426_p0 = scmp.ne.s32.totalorder %s630_s2, %s425_s25  ;;  %s34_s22 = int_to_ptr.vmem [resolvable:$true] %s33_s22 }
   0x5   :  { %p429_p1 = scmp.lt.u32.totalorder %s425_s25, %s630_s2 }
   0x7   :  { %p431_p2 = pnand %p429_p1, %p426_p0 }
   0x9   :  { %434 = shalt.err (!%p431_p2)
}
   0xa   :  { %s435_s30 = scalar_lea.vmem %s34_s22, 4096  ;;  %p440_p4 = scmp.lt.s32.totalorder %s34_s22, %s34_s22 }
   0xb   :  { %p436_p3 = scmp.ne.s32.totalorder %s34_s22, %s435_s30  ;;  %p441_p5 = scmp.lt.s32.totalorder %s435_s30, %s435_s30 }
   0xd   :  { %p442_p6 = por %p441_p5, %p440_p4 }
   0xf   :  { %p443_p7 = pnand %p442_p6, %p436_p3 }
  0x11   :  { %446 = shalt.err (!%p443_p7)
}
  0x12   :  { %s520_s7 = smov 256   ;;  %s521_s8 = smov 16  }
  0x13   :  { %39 = dma.hbm_to_vmem [thread:$0]  %s630_s2, 4096, %s34_s22, [#allocation6], %s520_s7, %s520_s7, %s521_s8  }
  0x14   :  { %s522_s11 = smov [#allocation2]   ;;  %s447_s15 = scalar_lea.hbm %s628_s0, 32 }
  0x15   :  { %s19_s12 = sshll.u32 %s522_s11, 4  ;;  %p448_p8 = scmp.ne.s32.totalorder %s628_s0, %s447_s15  ;;  %s20_s12 = int_to_ptr.vmem [resolvable:$true] %s19_s12 }
  0x16   :  { %p451_p9 = scmp.lt.u32.totalorder %s447_s15, %s628_s0 }
  0x18   :  { %p453_p10 = pnand %p451_p9, %p448_p8 }
  0x1a   :  { %456 = shalt.err (!%p453_p10)
}
  0x1b   :  { %s457_s20 = scalar_lea.vmem %s20_s12, 32  ;;  %s461_s2 = scalar_lea.vmem %s20_s12, 128 }
  0x1c   :  { %p458_p11 = scmp.ne.s32.totalorder %s20_s12, %s457_s20  ;;  %p462_p12 = scmp.lt.s32.totalorder %s20_s12, %s20_s12 }
  0x1d   :  { %p463_p13 = scmp.lt.s32.totalorder %s461_s2, %s457_s20 }
  0x1f   :  { %p464_p0 = por %p463_p13, %p462_p12 }
  0x21   :  { %p465_p1 = pnand %p464_p0, %p458_p11 }
  0x23   :  { %468 = shalt.err (!%p465_p1)
}
  0x24   :  { %s523_s21 = smov 32   ;;  %s524_s22 = smov 2  }
  0x25   :  { %25 = dma.hbm_to_vmem [thread:$0]  %s628_s0, 32, %s20_s12, [#allocation3], %s523_s21, %s523_s21, %s524_s22  }
  0x26   :  { %s525_s25 = smov [#allocation7]   ;;  %s469_s29 = scalar_lea.hbm %s632_s4, 4096 }
  0x27   :  { %s47_s26 = sshll.u32 %s525_s25, 4  ;;  %p470_p2 = scmp.ne.s32.totalorder %s632_s4, %s469_s29  ;;  %s48_s26 = int_to_ptr.vmem [resolvable:$true] %s47_s26 }
  0x28   :  { %p473_p3 = scmp.lt.u32.totalorder %s469_s29, %s632_s4 }
  0x2a   :  { %p475_p4 = pnand %p473_p3, %p470_p2 }
  0x2c   :  { %478 = shalt.err (!%p475_p4)
}
  0x2d   :  { %s479_s10 = scalar_lea.vmem %s48_s26, 4096  ;;  %p484_p6 = scmp.lt.s32.totalorder %s48_s26, %s48_s26 }
  0x2e   :  { %p480_p5 = scmp.ne.s32.totalorder %s48_s26, %s479_s10  ;;  %p485_p7 = scmp.lt.s32.totalorder %s479_s10, %s479_s10 }
  0x30   :  { %p486_p8 = por %p485_p7, %p484_p6 }
  0x32   :  { %p487_p9 = pnand %p486_p8, %p480_p5 }
  0x34   :  { %490 = shalt.err (!%p487_p9)
}
  0x35   :  { %s526_s0 = smov 128   ;;  %s527_s11 = smov 8  }
  0x36   :  { %53 = dma.hbm_to_vmem [thread:$0]  %s632_s4, 4096, %s48_s26, [#allocation6], %s526_s0, %s526_s0, %s527_s11  }
  0x37   :  { %513 = dma.done.wait [#allocation3], 128  }
  0x38   :  { %514 = vsyncadd [#allocation3], 4294967168 }
  0x39   :  { %515 = dma.done.wait [#allocation6], 8192  }
  0x3a   :  { %516 = vsyncadd [#allocation6], 4294959104  ;;  %v528_v0 = vmov 0.0   ;;  %v70_v1 = vld [vmem:[#allocation5 + $0x8] sm:$0xff]  ;;  %v72_v2 = vld [vmem:[#allocation5 + $0x18] sm:$0xff] }
  0x3b   :  { %177 = vmatprep.mubr.f32.mxu0 %v528_v0  ;;  %v69_v3 = vld [vmem:[#allocation5] sm:$0xff]  ;;  %v350_v4 = vpack.c.bf16 %v72_v2, %v70_v1  ;;  %v71_v5 = vld [vmem:[#allocation5 + $0x10] sm:$0xff]  ;;  %v74_v6 = vld [vmem:[#allocation5 + $0x28] sm:$0xff] }
  0x3c   :  { %v76_v7 = vld [vmem:[#allocation5 + $0x38] sm:$0xff]  ;;  %v352_v8 = vpack.c.bf16 %v71_v5, %v69_v3  ;;  %v73_v10 = vld [vmem:[#allocation5 + $0x20] sm:$0xff]  ;;  %v75_v11 = vld [vmem:[#allocation5 + $0x30] sm:$0xff] }
  0x3d   :  { %v354_v9 = vpack.c.bf16 %v76_v7, %v74_v6  ;;  %v78_v12 = vld [vmem:[#allocation5 + $0x48] sm:$0xff]  ;;  %351 = vmatprep.subr.bf16.mxu0 %v350_v4  ;;  %v80_v13 = vld [vmem:[#allocation5 + $0x58] sm:$0xff]  ;;  %v356_v14 = vpack.c.bf16 %v75_v11, %v73_v10  ;;  %v77_v16 = vld [vmem:[#allocation5 + $0x40] sm:$0xff] }
  0x3e   :  { %353 = vmatpush1.bf16.msra.mxu0 %v352_v8  ;;  %v358_v15 = vpack.c.bf16 %v80_v13, %v78_v12  ;;  %v79_v17 = vld [vmem:[#allocation5 + $0x50] sm:$0xff]  ;;  %v82_v18 = vld [vmem:[#allocation5 + $0x68] sm:$0xff]  ;;  %v84_v19 = vld [vmem:[#allocation5 + $0x78] sm:$0xff] }
  0x3f   :  { %355 = vmatprep.subr.bf16.mxu0 %v354_v9  ;;  %v360_v20 = vpack.c.bf16 %v79_v17, %v77_v16  ;;  %v362_v21 = vpack.c.bf16 %v84_v19, %v82_v18  ;;  %v81_v22 = vld [vmem:[#allocation5 + $0x60] sm:$0xff]  ;;  %v83_v23 = vld [vmem:[#allocation5 + $0x70] sm:$0xff]  ;;  %v86_v24 = vld [vmem:[#allocation5 + $0x88] sm:$0xff] }
  0x40   :  { %v88_v25 = vld [vmem:[#allocation5 + $0x98] sm:$0xff]  ;;  %v85_v26 = vld [vmem:[#allocation5 + $0x80] sm:$0xff]  ;;  %v87_v27 = vld [vmem:[#allocation5 + $0x90] sm:$0xff]  ;;  %v364_v30 = vpack.c.bf16 %v83_v23, %v81_v22 }
  0x41   :  { %v202_v28 = vld [vmem:[#allocation7 + $0x80] sm:$0xff]  ;;  %v203_v29 = vld [vmem:[#allocation7 + $0x88] sm:$0xff]  ;;  %v204_v35 = vld [vmem:[#allocation7 + $0x90] sm:$0xff]  ;;  %v366_v36 = vpack.c.bf16 %v88_v25, %v86_v24  ;;  %v368_v46 = vpack.c.bf16 %v87_v27, %v85_v26 }
  0x42   :  { %357 = vmatpush1.bf16.msra.mxu0 %v356_v14  ;;  %v90_v31 = vld [vmem:[#allocation5 + $0xa8] sm:$0xff]  ;;  %v382_v32 = vpack.c.bf16 %v203_v29, %v202_v28  ;;  %v186_v33 = vld [vmem:[#allocation7] sm:$0xff]  ;;  %v205_v38 = vld [vmem:[#allocation7 + $0x98] sm:$0xff] }
  0x43   :  { %359 = vmatprep.subr.bf16.mxu0 %v358_v15  ;;  %v187_v34 = vld [vmem:[#allocation7 + $0x8] sm:$0xff]  ;;  %v188_v39 = vld [vmem:[#allocation7 + $0x10] sm:$0xff]  ;;  %v189_v40 = vld [vmem:[#allocation7 + $0x18] sm:$0xff]  ;;  %v386_v42 = vpack.c.bf16 %v205_v38, %v204_v35 }
  0x44   :  { %v384_v37 = vpack.c.bf16 %v187_v34, %v186_v33  ;;  %v92_v41 = vld [vmem:[#allocation5 + $0xb8] sm:$0xff]  ;;  %383 = vmatprep.subr.bf16.mxu1 %v382_v32  ;;  %v206_v43 = vld [vmem:[#allocation7 + $0xa0] sm:$0xff]  ;;  %v207_v44 = vld [vmem:[#allocation7 + $0xa8] sm:$0xff]  ;;  %v388_v45 = vpack.c.bf16 %v189_v40, %v188_v39 }
  0x45   :  { %v89_v47 = vld [vmem:[#allocation5 + $0xa0] sm:$0xff]  ;;  %v390_v48 = vpack.c.bf16 %v207_v44, %v206_v43  ;;  %v191_v50 = vld [vmem:[#allocation7 + $0x28] sm:$0xff]  ;;  %v370_v51 = vpack.c.bf16 %v92_v41, %v90_v31  ;;  %v91_v52 = vld [vmem:[#allocation5 + $0xb0] sm:$0xff] }
  0x46   :  { %361 = vmatpush1.bf16.msra.mxu0 %v360_v20  ;;  %385 = vmatpush3.bf16.msra.mxu1 %v384_v37  ;;  %v190_v49 = vld [vmem:[#allocation7 + $0x20] sm:$0xff]  ;;  %v208_v53 = vld [vmem:[#allocation7 + $0xb0] sm:$0xff]  ;;  %v209_v54 = vld [vmem:[#allocation7 + $0xb8] sm:$0xff]  ;;  %v372_v58 = vpack.c.bf16 %v91_v52, %v89_v47  ;;  %v103_v37 = vlaneseq }
  0x47   :  { %363 = vmatprep.subr.bf16.mxu0 %v362_v21  ;;  %387 = vmatprep.subr.bf16.mxu1 %v386_v42  ;;  %v94_v55 = vld [vmem:[#allocation5 + $0xc8] sm:$0xff]  ;;  %v96_v56 = vld [vmem:[#allocation5 + $0xd8] sm:$0xff]  ;;  %v392_v57 = vpack.c.bf16 %v191_v50, %v190_v49  ;;  %v93_v59 = vld [vmem:[#allocation5 + $0xc0] sm:$0xff]  ;;  %v394_v60 = vpack.c.bf16 %v209_v54, %v208_v53 }
  0x48   :  { %v192_v61 = vld [vmem:[#allocation7 + $0x30] sm:$0xff]  ;;  %v193_v62 = vld [vmem:[#allocation7 + $0x38] sm:$0xff]  ;;  %v374_v63 = vpack.c.bf16 %v96_v56, %v94_v55  ;;  %v210_v1 = vld [vmem:[#allocation7 + $0xc0] sm:$0xff]  ;;  %v104_v38 = vshrl.u32 %v103_v37, 7 }
  0x49   :  { %v95_v0 = vld [vmem:[#allocation5 + $0xd0] sm:$0xff]  ;;  %v211_v2 = vld [vmem:[#allocation7 + $0xc8] sm:$0xff]  ;;  %v100_v4 = vld [vmem:[#allocation5 + $0xf8] sm:$0xff]  ;;  %v396_v7 = vpack.c.bf16 %v193_v62, %v192_v61 }
  0x4a   :  { %365 = vmatpush1.bf16.msra.mxu0 %v364_v30  ;;  %389 = vmatpush3.bf16.msra.mxu1 %v388_v45  ;;  %v98_v3 = vld [vmem:[#allocation5 + $0xe8] sm:$0xff]  ;;  %v97_v5 = vld [vmem:[#allocation5 + $0xe0] sm:$0xff]  ;;  %v65_v6 = vld [vmem:[#allocation2] sm:$0xff]  ;;  %v376_v8 = vpack.c.bf16 %v95_v0, %v93_v59  ;;  %v398_v10 = vpack.c.bf16 %v211_v2, %v210_v1  ;;  %v105_v39 = vsub.s32 0, %v104_v38  ;;  %v109_v41 = vsub.s32 1, %v104_v38 }
  0x4b   :  { %367 = vmatprep.subr.bf16.mxu0 %v366_v36  ;;  %391 = vmatprep.subr.bf16.mxu1 %v390_v48  ;;  %v66_v9 = vld [vmem:[%s629_s1] sm:$0xff]  ;;  %v194_v11 = vld [vmem:[#allocation7 + $0x40] sm:$0xff]  ;;  %v195_v12 = vld [vmem:[#allocation7 + $0x48] sm:$0xff]  ;;  %v378_v13 = vpack.c.bf16 %v100_v4, %v98_v3 }
  0x4c   :  { %v99_v14 = vld [vmem:[#allocation5 + $0xf0] sm:$0xff]  ;;  %v213_v16 = vld [vmem:[#allocation7 + $0xd8] sm:$0xff]  ;;  %v67_v17 = vadd.f32 %v66_v9, %v65_v6  ;;  %v400_v18 = vpack.c.bf16 %v195_v12, %v194_v11  ;;  %v214_v23 = vld [vmem:[#allocation7 + $0xe0] sm:$0xff] }
  0x4d   :  { %v212_v15 = vld [vmem:[#allocation7 + $0xd0] sm:$0xff]  ;;  %v380_v19 = vpack.c.bf16 %v99_v14, %v97_v5  ;;  %v197_v22 = vld [vmem:[#allocation7 + $0x58] sm:$0xff]  ;;  %v215_v24 = vld [vmem:[#allocation7 + $0xe8] sm:$0xff] }
  0x4e   :  { %369 = vmatpush1.bf16.msra.mxu0 %v368_v46  ;;  %393 = vmatpush3.bf16.msra.mxu1 %v392_v57  ;;  %v402_v20 = vpack.c.bf16 %v213_v16, %v212_v15  ;;  %v196_v21 = vld [vmem:[#allocation7 + $0x50] sm:$0xff]  ;;  %v68_v25 = vmul.f32 0.5, %v67_v17  ;;  %v406_v27 = vpack.c.bf16 %v215_v24, %v214_v23  ;;  %v198_v28 = vld [vmem:[#allocation7 + $0x60] sm:$0xff]  ;;  %v199_v29 = vld [vmem:[#allocation7 + $0x68] sm:$0xff] }
  0x4f   :  { %371 = vmatprep.subr.bf16.mxu0 %v370_v51  ;;  %395 = vmatprep.subr.bf16.mxu1 %v394_v60  ;;  %v404_v26 = vpack.c.bf16 %v197_v22, %v196_v21  ;;  %v408_v30 = vpack.c.bf16 %v199_v29, %v198_v28  ;;  %v216_v31 = vld [vmem:[#allocation7 + $0xf0] sm:$0xff]  ;;  %v217_v32 = vld [vmem:[#allocation7 + $0xf8] sm:$0xff] }
  0x50   :  { %v410_v33 = vpack.c.bf16 %v217_v32, %v216_v31  ;;  %v200_v34 = vld [vmem:[#allocation7 + $0x70] sm:$0xff]  ;;  %v201_v35 = vld [vmem:[#allocation7 + $0x78] sm:$0xff] }
  0x51   :  { %v412_v36 = vpack.c.bf16 %v201_v35, %v200_v34  ;;  %v101_v40 = vld [vmem:[%s631_s3] sm:$0x3] }
  0x52   :  { %373 = vmatpush1.bf16.msra.mxu0 %v372_v58  ;;  %397 = vmatpush3.bf16.msra.mxu1 %v396_v7  ;;  %v106_v42 = vrot.slane %v101_v40, %v105_v39  ;;  %v110_v43 = vrot.slane %v101_v40, %v109_v41  ;;  %v314_v51 = vld [vmem:[%s633_s5] ss:$0 sm:$0xff] }
  0x53   :  { %375 = vmatprep.subr.bf16.mxu0 %v374_v63  ;;  %399 = vmatprep.subr.bf16.mxu1 %v398_v10 }
  0x56   :  { %377 = vmatpush1.bf16.msra.mxu0 %v376_v8  ;;  %401 = vmatpush3.bf16.msra.mxu1 %v400_v18 }
  0x57   :  { %379 = vmatprep.subr.bf16.mxu0 %v378_v13  ;;  %403 = vmatprep.subr.bf16.mxu1 %v402_v20 }
  0x5a   :  { %381 = vmatpush1.bf16.msra.mxu0 %v380_v19  ;;  %405 = vmatpush3.bf16.msra.mxu1 %v404_v26 }
  0x5b   :  { %407 = vmatprep.subr.bf16.mxu1 %v406_v27 }
  0x5d   :  { %178 = vmatmul.mubr.f32.vlgmr.msra.gmra.mrb[0].mxu0 %v68_v25 }
  0x5e   :  { %409 = vmatpush3.bf16.msra.mxu1 %v408_v30 }
  0x5f   :  { %411 = vmatprep.subr.bf16.mxu1 %v410_v33 }
  0x62   :  { %413 = vmatpush3.bf16.msra.mxu1 %v412_v36 }
 0x130   :  { %v179_v44 = vpop.f32.mrb[0].mxu0 }
 0x131   :  { %v180_v45 = vadd.f32 %v179_v44, %v106_v42  ;;  %v181_v46 = vpop.f32.mrb[1].mxu0 }
 0x132   :  { %v182_v47 = vadd.f32 %v181_v46, %v110_v43 }
 0x133   :  { %v184_v49 = vmax.f32 %v180_v45, 0.0 }
 0x134   :  { %v185_v48 = vmax.f32 %v182_v47, 0.0 }
 0x136   :  { %289 = vmatprep.mubr.f32.mxu1 %v185_v48 }
 0x137   :  { %290 = vmatmul.mubr.f32.vlgmr.msra.gmra.mrb[0].mxu1 %v184_v49 }
 0x20a   :  { %v347_v50 = vpop.f32.mrb[0].mxu1 }
 0x20b   :  { %v348_v52 = vpop.f32.mrb[1].mxu1 }
 0x20c   :  { %v349_v53 = vadd.f32 %v348_v52, %v347_v50 }
 0x20e   :  { %v292_v54 = vadd.f32 %v349_v53, %v314_v51 }
 0x210   :  { %295 = vst [vmem:[#allocation8] sm:$0xff] %v292_v54 }
 0x211   :  { %300 = vsyncadd [#allocation4], 96  ;;  %s529_s3 = smov [#allocation8]  }
 0x212   :  { %s301_s18 = sshll.u32 %s529_s3, 4  ;;  %s302_s18 = int_to_ptr.vmem [resolvable:$true] %s301_s18 }
 0x213   :  { %s491_s19 = scalar_lea.vmem %s302_s18, 32  ;;  %s495_s20 = scalar_lea.vmem %s302_s18, 128 }
 0x214   :  { %p492_p10 = scmp.ne.s32.totalorder %s302_s18, %s491_s19  ;;  %p496_p11 = scmp.lt.s32.totalorder %s302_s18, %s302_s18 }
 0x215   :  { %p497_p12 = scmp.lt.s32.totalorder %s495_s20, %s491_s19 }
 0x217   :  { %p498_p13 = por %p497_p12, %p496_p11 }
 0x219   :  { %p499_p0 = pnand %p498_p13, %p492_p10 }
 0x21b   :  { %502 = shalt.err (!%p499_p0)
}
 0x21c   :  { %s503_s5 = scalar_lea.hbm %s634_s6, 32 }
 0x21d   :  { %p504_p1 = scmp.ne.s32.totalorder %s634_s6, %s503_s5  ;;  %p507_p2 = scmp.lt.u32.totalorder %s503_s5, %s634_s6 }
 0x21f   :  { %p509_p3 = pnand %p507_p2, %p504_p1 }
 0x221   :  { %512 = shalt.err (!%p509_p3)
}
 0x222   :  { %307 = dma.vmem_to_hbm [thread:$0]  %s302_s18, 32, %s634_s6, [#allocation4], %s523_s21, %s523_s21, %s524_s22  }
 0x223   :  { %517 = dma.done.wait [#allocation4], 128  }
 0x224   :  { %518 = vsyncadd [#allocation4], 4294967168 }
 0x225   :  { %311 = vsyncpa [#allocation3], 1 }
 0x226   :  { %312 = vsyncpa [#allocation6], 1 }
 0x227   :  { %313 = vsyncpa [#allocation4], 1 }

</bundles_post_ra>
